<compile_context>
chip_gen: v7x
topology: tpu7x:2x2x1
jax: 0.10.0
libtpu: 0.0.40
codegen_flags: <defaults>
</compile_context>

<pallas_src>
import functools

import jax
import jax.numpy as jnp
from jax.experimental import pallas as pl
from jax.experimental.pallas import tpu as pltpu


def _conv1x1_kernel(w_ref, b_ref, x_ref, o_ref):
    # w_ref: (C_out, C_in)   resident shared weight
    # b_ref: (C_out, 1)      resident shared bias (f32)
    # x_ref: (C_in,  thw)    one batch element, one lane-dense spatial tile
    # o_ref: (C_out, thw)
    acc = jnp.dot(w_ref[...], x_ref[...], preferred_element_type=jnp.float32)
    o_ref[...] = (acc + b_ref[...]).astype(o_ref.dtype)


def _round_up(x, m):
    return (x + m - 1) // m * m


def _pick_spatial_tile(hw, c_in, c_out, itemsize,
                       vmem_budget_bytes=24 * 1024 * 1024, max_tile=2048):
    """Largest lane-tile (multiple of 128) whose double-buffered input+output
    tiles stay inside a VMEM budget that is safe on v7x (64 MiB/TC)."""
    per_col = 2 * (c_in + c_out) * itemsize          # 2x = double buffering
    cap = max(128, (vmem_budget_bytes // per_col) // 128 * 128)
    return int(min(max_tile, cap, _round_up(hw, 128)))


@functools.partial(jax.jit, static_argnames=("tile",))
def _conv1x1_lane_dense(x, w, b, *, tile):
    """x: (B, C_in, HWp) with HWp % tile == 0; w: (C_out, C_in); b: (C_out, 1)."""
    B, c_in, hwp = x.shape
    c_out = w.shape[0]
    n_tiles = hwp // tile

    itemsize = jnp.dtype(x.dtype).itemsize
    x_bytes = B * c_in * hwp * itemsize
    o_bytes = B * c_out * hwp * itemsize
    w_bytes = w.size * jnp.dtype(w.dtype).itemsize
    b_bytes = b.size * jnp.dtype(b.dtype).itemsize

    # Resident weight/bias + double-buffered input/output tiles, with headroom;
    # capped at 48 MiB so it is valid on v7x (64 MiB/TC) as well as v5e/v6e.
    needed = w_bytes + b_bytes + 2 * (c_in + c_out) * tile * itemsize
    vmem_limit = int(min(max(4 * needed, 32 * 1024 * 1024), 48 * 1024 * 1024))

    return pl.pallas_call(
        _conv1x1_kernel,
        out_shape=jax.ShapeDtypeStruct((B, c_out, hwp), x.dtype),
        grid_spec=pltpu.PrefetchScalarGridSpec(
            num_scalar_prefetch=0,
            grid=(B, n_tiles),
            in_specs=[
                pl.BlockSpec((c_out, c_in), lambda bi, ti: (0, 0)),       # weight
                pl.BlockSpec((c_out, 1), lambda bi, ti: (0, 0)),          # bias
                pl.BlockSpec((None, c_in, tile), lambda bi, ti: (bi, 0, ti)),
            ],
            out_specs=pl.BlockSpec((None, c_out, tile), lambda bi, ti: (bi, 0, ti)),
        ),
        compiler_params=pltpu.CompilerParams(
            dimension_semantics=("parallel", "parallel"),
            vmem_limit_bytes=vmem_limit,
        ),
        cost_estimate=pl.CostEstimate(
            flops=2 * B * hwp * c_in * c_out,
            transcendentals=0,
            bytes_accessed=x_bytes + o_bytes + w_bytes + b_bytes,
        ),
    )(w, b, x)


def module_parallel_conv1x1(x_parallel, weight, bias, compute_dtype=None):
    """ModuleParallel forward: applies the shared 1x1 conv (weight, bias) to
    every NCHW tensor in `x_parallel`, returns a list of NCHW outputs.

    weight: (C_out, C_in, 1, 1) PyTorch Conv2d layout; bias: (C_out,)
    compute_dtype: optionally cast activations/weights (e.g. jnp.bfloat16 on
    v6e/v7x) to halve HBM traffic; accumulation stays f32 either way.
    """
    P = len(x_parallel)
    N, C_in, H, W = x_parallel[0].shape
    C_out = weight.shape[0]
    HW = H * W

    out_dtype = x_parallel[0].dtype

    # Stack parallel inputs; pure reshape keeps NCHW order -> (B, C_in, H*W)
    # with the big spatial axis on the 128-lane dimension.  No transposes.
    x = jnp.stack(x_parallel, axis=0).reshape(P * N, C_in, HW)
    if compute_dtype is not None:
        x = x.astype(compute_dtype)

    itemsize = jnp.dtype(x.dtype).itemsize
    tile = _pick_spatial_tile(HW, C_in, C_out, itemsize)
    HWp = _round_up(HW, tile)
    if HWp != HW:  # ragged spatial size (e.g. 14x14=196): zero-pad, slice back
        x = jnp.pad(x, ((0, 0), (0, 0), (0, HWp - HW)))

    w_mat = weight.reshape(C_out, C_in).astype(x.dtype)
    b_col = bias.reshape(C_out, 1).astype(jnp.float32)

    out = _conv1x1_lane_dense(x, w_mat, b_col, tile=tile)     # (B, C_out, HWp)
    out = out[:, :, :HW].astype(out_dtype).reshape(P, N, C_out, H, W)
    return [out[p] for p in range(P)]


# TODO(synk): ModuleParallel wraps an *arbitrary* nn.Module; only its common
# 1x1-Conv2d instantiation is kernelized here — other wrapped modules would
# need their own kernels, while the list semantics stay in this wrapper.


if __name__ == "__main__":
    # Small deterministic example: 2 parallel streams (e.g. RGB + depth branch),
    # batch=2, C_in=4, H=W=16, C_out=8.
    P, N, C_in, H, W, C_out = 2, 2, 4, 16, 16, 8

    key = jax.random.PRNGKey(0)
    kx0, kx1, kw, kb = jax.random.split(key, 4)
    x_parallel = [
        jax.random.normal(kx0, (N, C_in, H, W), dtype=jnp.float32),
        jax.random.normal(kx1, (N, C_in, H, W), dtype=jnp.float32),
    ]
    weight = jax.random.normal(kw, (C_out, C_in, 1, 1), dtype=jnp.float32) * 0.1
    bias = jax.random.normal(kb, (C_out,), dtype=jnp.float32) * 0.1

    outs = module_parallel_conv1x1(x_parallel, weight, bias)
    outs = jax.block_until_ready(outs)

    # Cross-check against a plain-JAX reference of the same forward pass.
    w_mat = weight.reshape(C_out, C_in)
    for xin, got in zip(x_parallel, outs):
        ref = jnp.einsum("nchw,oc->nohw", xin, w_mat) + bias.reshape(1, C_out, 1, 1)
        assert got.shape == (N, C_out, H, W)
        assert jnp.allclose(got, ref, atol=1e-4, rtol=1e-4)

    print("KERNEL_OK")
</pallas_src>

<mosaic_0001>
module attributes {stable_mosaic.version = 11 : i64} {
  func.func @_conv1x1_kernel(%arg0: i32, %arg1: i32, %arg2: memref<8x4xf32, #tpu.memory_space<vmem>>, %arg3: memref<8x1xf32, #tpu.memory_space<vmem>>, %arg4: memref<1x4x256xf32, #tpu.memory_space<vmem>>, %arg5: memref<1x8x256xf32, #tpu.memory_space<vmem>>) attributes {dimension_semantics = [#tpu.dimension_semantics<parallel>, #tpu.dimension_semantics<parallel>], iteration_bounds = array<i64: 4, 1>, scalar_prefetch = 0 : i64, scratch_operands = 0 : i64, tpu.core_type = #tpu.core_type<tc>, window_params = [{pipeline_mode = #tpu.pipeline_mode<synchronous>, transform_indices = @transform_0, window_bounds = array<i64: 8, 4>}, {pipeline_mode = #tpu.pipeline_mode<synchronous>, transform_indices = @transform_1, window_bounds = array<i64: 8, 1>}, {transform_indices = @transform_2, window_bounds = array<i64: 1, 4, 256>}, {transform_indices = @transform_3, window_bounds = array<i64: 1, 8, 256>}]} {
    %c0 = arith.constant 0 : index
    %c0_0 = arith.constant 0 : index
    %0 = vector.load %arg2[%c0, %c0_0] : memref<8x4xf32, #tpu.memory_space<vmem>>, vector<8x4xf32>
    %c0_1 = arith.constant 0 : index
    %c0_2 = arith.constant 0 : index
    %c0_3 = arith.constant 0 : index
    %1 = vector.load %arg4[%c0_1, %c0_2, %c0_3] : memref<1x4x256xf32, #tpu.memory_space<vmem>>, vector<1x4x256xf32>
    %2 = vector.shape_cast %1 : vector<1x4x256xf32> to vector<4x256xf32>
    %cst = arith.constant dense<0.000000e+00> : vector<8x256xf32>
    %3 = tpu.matmul %0, %2, %cst {dimension_numbers = #tpu.dot_dimension_numbers<[1], [0], [0], [1], [0, 0, 1, 1], [], []>} : vector<8x4xf32>, vector<4x256xf32>, vector<8x256xf32> -> vector<8x256xf32>
    %c0_4 = arith.constant 0 : index
    %c0_5 = arith.constant 0 : index
    %4 = vector.load %arg3[%c0_4, %c0_5] : memref<8x1xf32, #tpu.memory_space<vmem>>, vector<8x1xf32>
    %5 = vector.broadcast %4 : vector<8x1xf32> to vector<8x256xf32>
    %6 = arith.addf %3, %5 : vector<8x256xf32>
    %c0_6 = arith.constant 0 : index
    %c0_7 = arith.constant 0 : index
    %c0_8 = arith.constant 0 : index
    %7 = vector.load %arg5[%c0_6, %c0_7, %c0_8] : memref<1x8x256xf32, #tpu.memory_space<vmem>>, vector<1x8x256xf32>
    %8 = vector.shape_cast %7 : vector<1x8x256xf32> to vector<8x256xf32>
    %9 = vector.shape_cast %6 : vector<8x256xf32> to vector<1x8x256xf32>
    tpu.vector_store %arg5[%c0_6, %c0_7, %c0_8], %9 {strides = array<i32>} : memref<1x8x256xf32, #tpu.memory_space<vmem>>, vector<1x8x256xf32>,
    return
  }
  func.func @transform_0(%arg0: i32, %arg1: i32) -> (i32, i32) {
    %c0_i32 = arith.constant 0 : i32
    %c0_i32_0 = arith.constant 0 : i32
    %c0_i32_1 = arith.constant 0 : i32
    return %c0_i32, %c0_i32_0 : i32, i32
  }
  func.func @transform_1(%arg0: i32, %arg1: i32) -> (i32, i32) {
    %c0_i32 = arith.constant 0 : i32
    %c0_i32_0 = arith.constant 0 : i32
    %c0_i32_1 = arith.constant 0 : i32
    return %c0_i32, %c0_i32_0 : i32, i32
  }
  func.func @transform_2(%arg0: i32, %arg1: i32) -> (i32, i32, i32) {
    %c0_i32 = arith.constant 0 : i32
    %c0_i32_0 = arith.constant 0 : i32
    return %arg0, %c0_i32, %arg1 : i32, i32, i32
  }
  func.func @transform_3(%arg0: i32, %arg1: i32) -> (i32, i32, i32) {
    %c0_i32 = arith.constant 0 : i32
    %c0_i32_0 = arith.constant 0 : i32
    return %arg0, %c0_i32, %arg1 : i32, i32, i32
  }
}

</mosaic_0001>

<bundles_post_ra>
// kernel: _conv1x1_lane_dense.1
= control target key start
LH: loop header
LB: loop body
LE: loop exit
PB: predicated region body
PF: predicated region fallthrough
CT: control target
= control target key end

     0   :  { %8 = vsyncpa [#allocation3], 0  ;;  %s801_s0 = inlined_call_operand.vmem [shape: f32[8,4], index: 0, kind: input, shape index: {}]   ;;  %s802_s1 = inlined_call_operand.vmem [shape: f32[8,1], index: 1, kind: input, shape index: {}]   ;;  %s803_s2 = inlined_call_operand.hbm [shape: f32[4,4,256], index: 2, kind: input, shape index: {}]   ;;  %s804_s3 = inlined_call_operand.hbm [shape: f32[4,8,256], index: 3, kind: output, shape index: {}]  }
   0x1   :  { %10 = vsyncpa [#allocation3 + $0x1], 0 }
   0x2   :  { %11 = vsyncpa [#allocation4], 0 }
   0x3   :  { %13 = vsyncpa [#allocation4 + $0x1], 0  ;;  %s624_s12 = smov 0   ;;  %s626_s13 = smov 0  }
   0x4   :  { %s628_s14 = smov 0   ;;  %s630_s15 = smov 0  }
   0x5   :  { %s632_s16 = smov 0   ;;  %s634_s17 = smov 0  }
   0x6 LB: > { %s400_s18 = sadd.s32 4294967295, %s598_s17   ;;  %s401_s19 = sadd.s32 4294967294, %s598_s17   ;;  %s598_s17 = sphi %s634_s17, %s19_s17   ;;  %s594_s16 = sphi %s632_s16, %s819_s16   ;;  %s590_s15 = sphi %s630_s15, %s818_s15   ;;  %s586_s14 = sphi %s628_s14, %s817_s14   ;;  %s582_s13 = sphi %s626_s13, %s816_s13   ;;  %s578_s12 = sphi %s624_s12, %s815_s12  }
   0x7   : > { %s31_s20 = sadd.s32 1, %s594_s16  ;;  %s82_s21 = sadd.s32 1, %s586_s14 }
   0x8   : > { %p33_p0 = scmp.ge.s32.totalorder %s31_s20, 4  ;;  %p89_p1 = scmp.ne.s32.totalorder %s586_s14, %s582_s13 }
   0x9   : > { %p90_p2 = scmp.eq.s32.totalorder %s598_s17, 0  ;;  %p95_p3 = scmp.ne.s32.totalorder %s582_s13, %s578_s12 }
   0xa   : > { %s821_s20 = smov (%p33_p0, %s31_s20), 0  ;;  %p96_p5 = scmp.eq.s32.totalorder %s400_s18, 0 }
   0xb   : > { %p665_p4 = por %p90_p2, %p89_p1  ;;  %s77_s23 = ssub.s32 %s594_s16, %s821_s20 }
   0xc   : > { %p121_p6 = scmp.eq.s32.totalorder %s400_s18, 3  ;;  %p80_p7 = scmp.eq.s32.totalorder %s77_s23, 0 }
   0xd   : > { %p671_p8 = por %p96_p5, %p95_p3  ;;  %p127_p10 = scmp.eq.s32.totalorder %s401_s19, 3 }
   0xe   : > { %p675_p9 = por %p121_p6, %p89_p1  ;;  %p432_p12 = scmp.lt.s32.totalorder %s598_s17, 4 }
   0xf   : > { %s680_s26 = scalar_select %p80_p7, %s586_s14, %s82_s21  }
  0x10   : > { %s808_s25 = scalar_select %p675_p9, 1, 0 }
  0x11   : > { %p682_p11 = por %p127_p10, %p95_p3  ;;  %s153_s28 = sand.u32 1, %s586_s14  }
  0x12   : > { %s404_s29 = sshll.u32 %s153_s28, 3  ;;  %s418_s30 = sshll.u32 %s594_s16, 7 }
  0x13   : > { %s809_s27 = scalar_select %p682_p11, 1, 0 }
  0x14   : > { %s692_s6 = scalar_lea.hbm %s803_s2, %s418_s30  ;;  %s157_s7 = scalar_lea.vmem [#allocation2], %s404_s29 }
  0x15   : > { %s167_s8 = sshll.u32 %s157_s7, 4  ;;  %p698_p13 = pnand %p432_p12, %p665_p4  ;;  %s694_s8 = int_to_ptr.vmem [resolvable:$true] %s167_s8 }
  0x16   : > { %s154_s10 = scalar_lea.sflag [#allocation3], %s153_s28  ;;  %s486_s11 = scalar_lea.hbm %s692_s6, 128 }
  0x17   : > { %p487_p2 = scmp.ne.s32.totalorder %s692_s6, %s486_s11  ;;  %p488_p3 = pneg %p698_p13 }
  0x18   : > { %s491_s21 = scalar_lea.hbm %s803_s2, 512  ;;  %p492_p4 = scmp.lt.u32.totalorder %s692_s6, %s803_s2 }
  0x19   : > { %p489_p5 = pnand %p488_p3, %p487_p2  ;;  %p493_p7 = scmp.lt.u32.totalorder %s491_s21, %s486_s11 }
  0x1a   : > { %p495_p12 = scmp.lt.u32.totalorder %s486_s11, %s692_s6 }
  0x1b   : > { %p490_p6 = pneg %p489_p5  ;;  %p494_p10 = por %p493_p7, %p492_p4 }
  0x1d   : > { %p496_p0 = por %p495_p12, %p494_p10 }
  0x1f   : > { %p497_p1 = pnand %p496_p0, %p490_p6 }
  0x21   : > { %500 = shalt.err (!%p497_p1)
}
  0x22   : > { %s501_s28 = scalar_lea.vmem %s694_s8, 128  ;;  %s600_s29 = smov [#allocation2]  }
  0x23   : > { %p502_p2 = scmp.ne.s32.totalorder %s694_s8, %s501_s28  ;;  %s506_s30 = sshll.u32 %s600_s29, 4  ;;  %s507_s30 = int_to_ptr.vmem [resolvable:$false] %s506_s30 }
  0x24   : > { %s508_s4 = scalar_lea.vmem %s507_s30, 256  ;;  %p509_p9 = scmp.lt.s32.totalorder %s694_s8, %s507_s30 }
  0x25   : > { %p504_p5 = pnand %p502_p2, %p488_p3  ;;  %p510_p4 = scmp.lt.s32.totalorder %s508_s4, %s501_s28 }
  0x27   : > { %p505_p11 = pneg %p504_p5  ;;  %p511_p7 = por %p510_p4, %p509_p9 }
  0x29   : > { %p512_p10 = pnand %p511_p7, %p505_p11 }
  0x2b   : > { %515 = shalt.err (!%p512_p10)
}
  0x2c   : > { %427 = dma.hbm_to_vmem [thread:$0]  (!%p698_p13), %s692_s6, 128, %s694_s8, %s154_s10  }
  0x2d   : > { %p811_p0 = scmp.lt.s32.totalorder %s598_s17, 5  ;;  %p812_p1 = scmp.ge.s32.totalorder %s598_s17, 1 }
  0x2f   : > { %p173_p3 = pnand %p812_p1, %p811_p0 }
  0x30   : > { %s734_s5 = sand.u32 (!%p173_p3), 1, %s582_s13  }
  0x31   : > { %176 = sbr.rel (%p173_p3) target bundleno = 291 (0x123), region = 32  ;;  %s408_s7 = sshll.u32 (!%p173_p3), %s734_s5, 3 }
  0x32   : > { %s179_s11 = scalar_lea.sflag (!%p173_p3), [#allocation3], %s734_s5  ;;  %s182_s18 = scalar_lea.vmem (!%p173_p3), [#allocation2], %s408_s7 }
  0x38   : > { %569 = dma.done.wait (%p671_p8), %s179_s11, 128  }
  0x39   : > { %571 = vsyncadd (%p671_p8), %s179_s11, 4294967168  ;;  %v601_v0 = vmov 0.0   ;;  %v602_v1 = vmov 0   ;;  %v208_v2 = vld [vmem:[%s182_s18] sm:$0xff]  ;;  %vm221_vm0 = vcmask 1043456   ;;  %vm217_vm1 = vcmask 31744  }
  0x3a   : > { %290 = vmatprep.mubr.f32.mxu0 %v601_v0  ;;  %484 = vset.pattern.permute.xlu0 %v602_v1  ;;  %v209_v3 = vld [vmem:[%s802_s1] sm:$0xff]  ;;  %v216_v4 = vcombine.high %v208_v2, %v208_v2  ;;  %s409_s24 = sshll.u32 %s734_s5, 4  ;;  %s419_s19 = sshll.u32 %s590_s15, 8 }
  0x3b   : > { %212 = vperm.xlu0 %484, %v209_v3   ;;  %v207_v5 = vld [vmem:[%s801_s0] sm:$0xff]  ;;  %s204_s21 = scalar_lea.vmem [#allocation5], %s409_s24  ;;  %s753_s29 = scalar_lea.hbm %s804_s3, %s419_s19 }
  0x3c   : > { %410 = vmatprep.subr.msk.mxu0 %vm221_vm0, %v216_v4  ;;  %s316_s22 = sshll.u32 %s204_s21, 4  ;;  %s300_s30 = scalar_lea.sflag [#allocation4], %s734_s5  ;;  %s755_s22 = int_to_ptr.vmem [resolvable:$true] %s316_s22 }
  0x3d   : > { %411 = vmatpush1.msk.msra.mxu0 %vm221_vm0, %v208_v2  ;;  %s516_s15 = scalar_lea.vmem %s755_s22, 256  ;;  %p813_p9 = scmp.ne.s32.totalorder %s808_s25, 0 }
  0x3e   : > { %412 = vmatmul.mubr.msk.f32.vlgmr.msra.gmra.mrb[0].mxu0 %vm217_vm1, %v207_v5  ;;  %p517_p8 = scmp.ne.s32.totalorder %s755_s22, %s516_s15  ;;  %s603_s4 = smov [#allocation5]  }
  0x3f   : > { %s520_s7 = sshll.u32 %s603_s4, 4  ;;  %s521_s7 = int_to_ptr.vmem [resolvable:$false] %s520_s7 }
  0x40   : > { %p518_p11 = pnand %p517_p8, %p813_p9  ;;  %s522_s11 = scalar_lea.vmem %s521_s7, 512 }
  0x41   : > { %p523_p6 = scmp.lt.s32.totalorder %s755_s22, %s521_s7  ;;  %p524_p12 = scmp.lt.s32.totalorder %s522_s11, %s516_s15 }
  0x42   : > { %p519_p13 = pneg %p518_p11 }
  0x43   : > { %p525_p2 = por %p524_p12, %p523_p6 }
  0x45   : > { %p526_p5 = pnand %p525_p2, %p519_p13 }
  0xba   : > { %v213_v6 = vpop.permute.xlu0 %212 }
 0x111   : > { %v292_v7 = vpop.f32.mrb[0].mxu0 }
 0x112   : > { %v293_v8 = vadd.f32 %v292_v7, %v213_v6  ;;  %v294_v9 = vpop.f32.mrb[1].mxu0 }
 0x113   : > { %v295_v10 = vadd.f32 %v294_v9, %v213_v6 }
 0x114   : > { %297 = vst [vmem:[%s204_s21] sm:$0xff] %v293_v8 }
 0x115   : > { %298 = vst [vmem:[%s204_s21 + $0x8] sm:$0xff] %v295_v10 }
 0x116   : > { %529 = shalt.err (!%p526_p5)
}
 0x117   : > { %s530_s5 = scalar_lea.hbm %s753_s29, 256  ;;  %s534_s8 = scalar_lea.hbm %s804_s3, 1024 }
 0x118   : > { %p531_p4 = scmp.ne.s32.totalorder %s753_s29, %s530_s5  ;;  %p535_p0 = scmp.lt.u32.totalorder %s753_s29, %s804_s3 }
 0x119   : > { %p536_p1 = scmp.lt.u32.totalorder %s534_s8, %s530_s5  ;;  %p538_p8 = scmp.lt.u32.totalorder %s530_s5, %s753_s29 }
 0x11a   : > { %p532_p7 = pnand %p531_p4, %p813_p9 }
 0x11b   : > { %p537_p3 = por %p536_p1, %p535_p0 }
 0x11c   : > { %p533_p10 = pneg %p532_p7 }
 0x11d   : > { %p539_p11 = por %p538_p8, %p537_p3 }
 0x11f   : > { %p540_p13 = pnand %p539_p11, %p533_p10 }
 0x121   : > { %543 = shalt.err (!%p540_p13)
}
 0x122   : > { %422 = dma.vmem_to_hbm [thread:$0]  (%p813_p9), %s755_s22, 256, %s753_s29, %s300_s30  }
 0x123 PF: > { %p433_p6 = scmp.ge.s32.totalorder %s598_s17, 2  ;;  %s328_s24 = sand.u32 1, %s578_s12  }
 0x124   : > { %p814_p12 = scmp.ne.s32.totalorder %s809_s27, 0  ;;  %s329_s19 = scalar_lea.sflag [#allocation4], %s328_s24 }
 0x126   : > { %p429_p2 = pnand %p433_p6, %p814_p12 }
 0x128   : > { %573 = dma.done.wait (!%p429_p2), %s329_s19, 256  }
 0x129   : > { %575 = vsyncadd (!%p429_p2), %s329_s19, 4294967040  ;;  %s19_s17 = sadd.s32 1, %s598_s17   ;;  %s815_s12 = smov %s582_s13 }
 0x12a   : > { %p16_p5 = scmp.ge.s32.totalorder %s19_s17, 6   ;;  %s816_s13 = smov %s586_s14 }
 0x12b   : > { %s817_s14 = smov %s680_s26  ;;  %s818_s15 = smov %s594_s16 }
 0x12c   : > { %s819_s16 = smov %s821_s20  ;;  %18 = sbr.rel (!%p16_p5) target bundleno = 6 (0x6), region = 77 }
 0x133   :  { %334 = vsyncpa [#allocation3], 1 }
 0x134   :  { %336 = vsyncpa [#allocation3 + $0x1], 1 }
 0x135   :  { %337 = vsyncpa [#allocation4], 1 }
 0x136   :  { %339 = vsyncpa [#allocation4 + $0x1], 1 }

</bundles_post_ra>
